<compile_context>
chip_gen: v5e
topology: v5e:2x2
jax: 0.10.0
libtpu: 0.0.40
codegen_flags: <defaults>
</compile_context>

<pallas_src>
import functools

import jax
import jax.numpy as jnp
from jax.experimental import pallas as pl
from jax.experimental.pallas import tpu as pltpu


def _lsce_kernel(logits_ref, label_ref, sum_ref, cnt_ref,
                 *, lb_pos, lb_neg, lb_sum, ignore_index,
                 total_cols, tile_cols):
    l = pl.program_id(1)

    x = logits_ref[...].astype(jnp.float32)                 # (C, tL)  bf16 upcast in-register
    lbl = label_ref[...].astype(jnp.int32)                  # (1, tL)

    # validity: label != ignore_index AND inside the real [0, L) column range
    # (masks both the loss and the count for ragged / padded tiles).
    col = l * tile_cols + jax.lax.broadcasted_iota(jnp.int32, lbl.shape, 1)
    valid = (lbl != ignore_index) & (col < total_cols)      # (1, tL)
    lbl_safe = jnp.where(valid, lbl, 0)

    # log-softmax normalizer along the class (sublane) axis.
    m = jnp.max(x, axis=0, keepdims=True)                   # (1, tL)
    z = jnp.sum(jnp.exp(x - m), axis=0, keepdims=True)      # (1, tL)
    logz = m + jnp.log(z)                                    # (1, tL)

    # Fused smoothed one-hot dot product (single (C, tL) sublane reduction).
    cls = jax.lax.broadcasted_iota(jnp.int32, x.shape, 0)    # (C, tL)
    w = jnp.where(cls == lbl_safe, lb_pos, lb_neg)           # (C, tL)
    wsum = jnp.sum(w * x, axis=0, keepdims=True)             # (1, tL)

    loss = lb_sum * logz - wsum                              # (1, tL)
    # True select (NOT multiplicative masking): padded / ignored columns may hold
    # garbage (NaN/Inf) logits; the select keeps them out of the reduction.
    loss = jnp.where(valid, loss, 0.0)

    # Per-(batch, column-tile) partials: no carried accumulator, both grid axes
    # stay fully parallel, and the count is exact (int32 per tile).
    sum_ref[...] = jnp.sum(loss, keepdims=True)
    cnt_ref[...] = jnp.sum(valid.astype(jnp.int32), keepdims=True)


def _vmem_limit_bytes():
    """Generation-aware scoped-VMEM request: ~3/4 of physical, capped at 96 MiB.

    128 MiB parts (v5e / v6e) -> 96 MiB; 64 MiB parts (v7x) -> 48 MiB."""
    cap = 0
    try:
        cap = int(getattr(pltpu.get_tpu_info(), "vmem_capacity_bytes", 0))
    except Exception:
        cap = 0
    if cap <= 0:
        cap = 64 * 1024 * 1024          # conservative (v7x-sized) fallback
    return min(96 * 1024 * 1024, (cap * 3) // 4)


def _pick_tile_cols(num_cols, num_classes, logit_itemsize, label_itemsize,
                    vmem_limit_bytes):
    """Largest lane tile (multiple of 128) whose working set fits the VMEM budget.

    Per lane-column footprint: 2x double-buffered logits column + 2x label column
    + ~4 f32 (C,)-sized kernel temporaries (f32 upcast, exp, weights, iota)."""
    per_col = num_classes * (2 * logit_itemsize + 16) + 2 * label_itemsize
    budget = int(vmem_limit_bytes * 0.6)            # headroom for compiler scratch
    t = budget // max(1, per_col)
    t = min(t, 128 * 1024)                          # sanity cap on one block
    t = (t // 128) * 128
    floor = 512 if 512 * per_col <= budget else 128  # >=512-lane DMA rows (v5e HBM)
    t = max(t, floor)
    if num_cols <= t:
        return num_cols                              # full-extent last dim is legal
    return t


def label_smooth_softmax_ce(logits, label, *, lb_smooth=0.1,
                            reduction="mean", ignore_index=-100,
                            tile_cols=None):
    """logits: (N, C, H, W) float (f32 or bf16); label: (N, H, W) int -> scalar loss."""
    N, C, H, W = logits.shape
    L = H * W
    lb_pos = 1.0 - lb_smooth
    lb_neg = lb_smooth / C
    lb_sum = lb_pos + (C - 1) * lb_neg               # = 1 - lb_smooth / C

    # Copy-free layout: collapse spatial dims; classes on sublanes, spatial on lanes.
    # No transpose / pad / astype of the logits, and labels are passed through in
    # their native (<=32-bit) integer dtype (cast happens in-kernel after the load).
    x = logits.reshape(N, C, L)
    y = label.reshape(N, 1, L)
    if not (jnp.issubdtype(y.dtype, jnp.integer) and y.dtype.itemsize <= 4):
        y = y.astype(jnp.int32)                      # only copies for e.g. int64 labels

    vmem_limit = _vmem_limit_bytes()
    if tile_cols is None:
        tile_cols = _pick_tile_cols(L, C, x.dtype.itemsize, y.dtype.itemsize,
                                    vmem_limit)
    n_col_tiles = pl.cdiv(L, tile_cols)

    kernel = functools.partial(
        _lsce_kernel, lb_pos=lb_pos, lb_neg=lb_neg, lb_sum=lb_sum,
        ignore_index=ignore_index, total_cols=L, tile_cols=tile_cols)

    cost = pl.CostEstimate(
        flops=8 * N * C * L,
        transcendentals=N * C * L + N * L,
        bytes_accessed=(x.size * x.dtype.itemsize + y.size * y.dtype.itemsize
                        + 2 * N * n_col_tiles * 4),
    )

    loss_part, cnt_part = pl.pallas_call(
        kernel,
        out_shape=(jax.ShapeDtypeStruct((N, n_col_tiles, 1, 1), jnp.float32),
                   jax.ShapeDtypeStruct((N, n_col_tiles, 1, 1), jnp.int32)),
        grid=(N, n_col_tiles),
        in_specs=[
            pl.BlockSpec((None, C, tile_cols), lambda n, l: (n, 0, l)),
            pl.BlockSpec((None, 1, tile_cols), lambda n, l: (n, 0, l)),
        ],
        out_specs=(
            pl.BlockSpec((None, None, 1, 1), lambda n, l: (n, l, 0, 0)),
            pl.BlockSpec((None, None, 1, 1), lambda n, l: (n, l, 0, 0)),
        ),
        compiler_params=pltpu.CompilerParams(
            dimension_semantics=("parallel", "parallel"),
            vmem_limit_bytes=vmem_limit,
        ),
        cost_estimate=cost,
    )(x, y)

    total = jnp.sum(loss_part)                        # tiny host-of-partials reduce
    n_valid = jnp.sum(cnt_part)                       # exact int32 count
    if reduction == "mean":
        # Matches PyTorch: divides by n_valid even if it is zero (-> inf/nan).
        return total / n_valid.astype(jnp.float32)
    if reduction == "sum":
        return total
    # TODO(synk): reduction='none' (per-pixel loss map) not implemented in the Pallas path.
    raise ValueError("only 'mean' and 'sum' reductions are supported here")


def _reference(logits, label, *, lb_smooth=0.1, ignore_index=-100):
    # pure-JAX reference mirroring the PyTorch module
    logits = logits.astype(jnp.float32)
    N, C, H, W = logits.shape
    ignore = label == ignore_index
    n_valid = jnp.sum(~ignore)
    lbl = jnp.where(ignore, 0, label)
    lb_pos, lb_neg = 1.0 - lb_smooth, lb_smooth / C
    one_hot = jax.nn.one_hot(lbl, C, axis=1, dtype=jnp.float32)
    lb_one_hot = one_hot * lb_pos + (1.0 - one_hot) * lb_neg
    logs = jax.nn.log_softmax(logits, axis=1)
    loss = -jnp.sum(logs * lb_one_hot, axis=1)
    loss = jnp.where(ignore, 0.0, loss)
    return jnp.sum(loss) / n_valid


if __name__ == "__main__":
    key = jax.random.PRNGKey(0)
    k1, k2, k3 = jax.random.split(key, 3)

    # --- test 1: f32 logits, NCHW, spatial 16x16 ---
    N, C, H, W = 2, 4, 16, 16
    logits = jax.random.normal(k1, (N, C, H, W), dtype=jnp.float32)
    label = jax.random.randint(k2, (N, H, W), 0, C, dtype=jnp.int32)
    ign_mask = jax.random.bernoulli(k3, 0.1, (N, H, W))
    label = jnp.where(ign_mask, -100, label)

    out = jax.block_until_ready(label_smooth_softmax_ce(logits, label))
    ref = _reference(logits, label)
    assert jnp.allclose(out, ref, atol=2e-5, rtol=2e-5), (out, ref)

    # --- test 2: bf16 logits + ragged column tiles (L = 200 with tile_cols=128) ---
    H2, W2 = 10, 20
    logits2 = jax.random.normal(k1, (N, C, H2, W2), dtype=jnp.float32).astype(jnp.bfloat16)
    label2 = jax.random.randint(k2, (N, H2, W2), 0, C, dtype=jnp.int32)
    ign2 = jax.random.bernoulli(k3, 0.1, (N, H2, W2))
    label2 = jnp.where(ign2, -100, label2)

    out2 = jax.block_until_ready(
        label_smooth_softmax_ce(logits2, label2, tile_cols=128))
    ref2 = _reference(logits2, label2)
    assert jnp.allclose(out2, ref2, atol=1e-4, rtol=1e-4), (out2, ref2)

    print("KERNEL_OK")
</pallas_src>

<mosaic_0001>
module attributes {stable_mosaic.version = 11 : i64} {
  func.func @_lsce_kernel(%arg0: i32, %arg1: i32, %arg2: memref<1x4x256xf32, #tpu.memory_space<vmem>>, %arg3: memref<1x1x256xi32, #tpu.memory_space<vmem>>, %arg4: memref<1x1x1x1xf32, #tpu.memory_space<vmem>>, %arg5: memref<1x1x1x1xi32, #tpu.memory_space<vmem>>) attributes {dimension_semantics = [#tpu.dimension_semantics<parallel>, #tpu.dimension_semantics<parallel>], iteration_bounds = array<i64: 2, 1>, scalar_prefetch = 0 : i64, scratch_operands = 0 : i64, tpu.core_type = #tpu.core_type<tc>, window_params = [{transform_indices = @transform_0, window_bounds = array<i64: 1, 4, 256>}, {transform_indices = @transform_1, window_bounds = array<i64: 1, 1, 256>}, {transform_indices = @transform_2, window_bounds = array<i64: 1, 1, 1, 1>}, {transform_indices = @transform_3, window_bounds = array<i64: 1, 1, 1, 1>}]} {
    %c0 = arith.constant 0 : index
    %c0_0 = arith.constant 0 : index
    %c0_1 = arith.constant 0 : index
    %0 = vector.load %arg2[%c0, %c0_0, %c0_1] : memref<1x4x256xf32, #tpu.memory_space<vmem>>, vector<1x4x256xf32>
    %1 = vector.shape_cast %0 : vector<1x4x256xf32> to vector<4x256xf32>
    %c0_2 = arith.constant 0 : index
    %c0_3 = arith.constant 0 : index
    %c0_4 = arith.constant 0 : index
    %2 = vector.load %arg3[%c0_2, %c0_3, %c0_4] : memref<1x1x256xi32, #tpu.memory_space<vmem>>, vector<1x1x256xi32>
    %3 = vector.shape_cast %2 : vector<1x1x256xi32> to vector<1x256xi32>
    %c256_i32 = arith.constant 256 : i32
    %4 = arith.muli %arg1, %c256_i32 : i32
    %5 = tpu.iota {dimensions = array<i32: 1>} : vector<1x256xi32>
    %6 = vector.broadcast %4 : i32 to vector<1x256xi32>
    %7 = arith.addi %6, %5 : vector<1x256xi32>
    %c-100_i32 = arith.constant -100 : i32
    %8 = vector.broadcast %c-100_i32 : i32 to vector<1x256xi32>
    %9 = arith.cmpi ne, %3, %8 : vector<1x256xi32>
    %c256_i32_5 = arith.constant 256 : i32
    %10 = vector.broadcast %c256_i32_5 : i32 to vector<1x256xi32>
    %11 = arith.cmpi slt, %7, %10 : vector<1x256xi32>
    %12 = arith.andi %9, %11 : vector<1x256xi1>
    %c0_i32 = arith.constant 0 : i32
    %13 = vector.broadcast %c0_i32 : i32 to vector<1x256xi32>
    %14 = arith.select %12, %3, %13 : vector<1x256xi1>, vector<1x256xi32>
    %cst = arith.constant dense<0xFF800000> : vector<256xf32>
    %15 = vector.multi_reduction <maximumf>, %1, %cst [0] : vector<4x256xf32> to vector<256xf32>
    %16 = vector.shape_cast %15 : vector<256xf32> to vector<1x256xf32>
    %17 = vector.broadcast %16 : vector<1x256xf32> to vector<4x256xf32>
    %18 = arith.subf %1, %17 : vector<4x256xf32>
    %19 = math.exp %18 : vector<4x256xf32>
    %cst_6 = arith.constant dense<0.000000e+00> : vector<256xf32>
    %20 = vector.multi_reduction <add>, %19, %cst_6 [0] : vector<4x256xf32> to vector<256xf32>
    %21 = vector.shape_cast %20 : vector<256xf32> to vector<1x256xf32>
    %22 = math.log %21 : vector<1x256xf32>
    %23 = arith.addf %16, %22 : vector<1x256xf32>
    %24 = tpu.iota {dimensions = array<i32: 0>} : vector<4x256xi32>
    %25 = vector.broadcast %14 : vector<1x256xi32> to vector<4x256xi32>
    %26 = arith.cmpi eq, %24, %25 : vector<4x256xi32>
    %cst_7 = arith.constant 0.899999976 : f32
    %cst_8 = arith.constant 2.500000e-02 : f32
    %27 = vector.broadcast %cst_7 : f32 to vector<4x256xf32>
    %28 = vector.broadcast %cst_8 : f32 to vector<4x256xf32>
    %29 = arith.select %26, %27, %28 : vector<4x256xi1>, vector<4x256xf32>
    %30 = arith.mulf %29, %1 : vector<4x256xf32>
    %cst_9 = arith.constant dense<0.000000e+00> : vector<256xf32>
    %31 = vector.multi_reduction <add>, %30, %cst_9 [0] : vector<4x256xf32> to vector<256xf32>
    %32 = vector.shape_cast %31 : vector<256xf32> to vector<1x256xf32>
    %cst_10 = arith.constant 9.750000e-01 : f32
    %33 = vector.broadcast %cst_10 : f32 to vector<1x256xf32>
    %34 = arith.mulf %33, %23 : vector<1x256xf32>
    %35 = arith.subf %34, %32 : vector<1x256xf32>
    %cst_11 = arith.constant 0.000000e+00 : f32
    %36 = vector.broadcast %cst_11 : f32 to vector<1x256xf32>
    %37 = arith.select %12, %35, %36 : vector<1x256xi1>, vector<1x256xf32>
    %38 = vector.shape_cast %37 : vector<1x256xf32> to vector<1x1x256xf32>
    %cst_12 = arith.constant dense<0.000000e+00> : vector<1xf32>
    %39 = vector.multi_reduction <add>, %38, %cst_12 [1, 2] : vector<1x1x256xf32> to vector<1xf32>
    %40 = vector.shape_cast %39 : vector<1xf32> to vector<1x1x1xf32>
    %41 = vector.extract %40[0, 0, 0] : f32 from vector<1x1x1xf32>
    %42 = vector.broadcast %41 : f32 to vector<1x1xf32>
    %c0_13 = arith.constant 0 : index
    %c0_14 = arith.constant 0 : index
    %c0_15 = arith.constant 0 : index
    %c0_16 = arith.constant 0 : index
    %43 = vector.load %arg4[%c0_13, %c0_14, %c0_15, %c0_16] : memref<1x1x1x1xf32, #tpu.memory_space<vmem>>, vector<1x1x1x1xf32>
    %44 = vector.shape_cast %43 : vector<1x1x1x1xf32> to vector<1x1xf32>
    %45 = vector.shape_cast %42 : vector<1x1xf32> to vector<1x1x1x1xf32>
    tpu.vector_store %arg4[%c0_13, %c0_14, %c0_15, %c0_16], %45 {strides = array<i32>} : memref<1x1x1x1xf32, #tpu.memory_space<vmem>>, vector<1x1x1x1xf32>,
    %46 = arith.extui %12 : vector<1x256xi1> to vector<1x256xi32>
    %47 = vector.shape_cast %46 : vector<1x256xi32> to vector<1x1x256xi32>
    %cst_17 = arith.constant dense<0> : vector<1xi32>
    %48 = vector.multi_reduction <add>, %47, %cst_17 [1, 2] : vector<1x1x256xi32> to vector<1xi32>
    %49 = vector.shape_cast %48 : vector<1xi32> to vector<1x1x1xi32>
    %50 = vector.extract %49[0, 0, 0] : i32 from vector<1x1x1xi32>
    %51 = vector.broadcast %50 : i32 to vector<1x1xi32>
    %c0_18 = arith.constant 0 : index
    %c0_19 = arith.constant 0 : index
    %c0_20 = arith.constant 0 : index
    %c0_21 = arith.constant 0 : index
    %52 = vector.load %arg5[%c0_18, %c0_19, %c0_20, %c0_21] : memref<1x1x1x1xi32, #tpu.memory_space<vmem>>, vector<1x1x1x1xi32>
    %53 = vector.shape_cast %52 : vector<1x1x1x1xi32> to vector<1x1xi32>
    %54 = vector.shape_cast %51 : vector<1x1xi32> to vector<1x1x1x1xi32>
    tpu.vector_store %arg5[%c0_18, %c0_19, %c0_20, %c0_21], %54 {strides = array<i32>} : memref<1x1x1x1xi32, #tpu.memory_space<vmem>>, vector<1x1x1x1xi32>,
    return
  }
  func.func @transform_0(%arg0: i32, %arg1: i32) -> (i32, i32, i32) {
    %c0_i32 = arith.constant 0 : i32
    %c0_i32_0 = arith.constant 0 : i32
    return %arg0, %c0_i32, %arg1 : i32, i32, i32
  }
  func.func @transform_1(%arg0: i32, %arg1: i32) -> (i32, i32, i32) {
    %c0_i32 = arith.constant 0 : i32
    %c0_i32_0 = arith.constant 0 : i32
    return %arg0, %c0_i32, %arg1 : i32, i32, i32
  }
  func.func @transform_2(%arg0: i32, %arg1: i32) -> (i32, i32, i32, i32) {
    %c0_i32 = arith.constant 0 : i32
    %c0_i32_0 = arith.constant 0 : i32
    %c0_i32_1 = arith.constant 0 : i32
    return %arg0, %arg1, %c0_i32, %c0_i32_0 : i32, i32, i32, i32
  }
  func.func @transform_3(%arg0: i32, %arg1: i32) -> (i32, i32, i32, i32) {
    %c0_i32 = arith.constant 0 : i32
    %c0_i32_0 = arith.constant 0 : i32
    %c0_i32_1 = arith.constant 0 : i32
    return %arg0, %arg1, %c0_i32, %c0_i32_0 : i32, i32, i32, i32
  }
}

</mosaic_0001>

<bundles_post_ra>
// kernel: tpu_custom_call.1
= control target key start
LH: loop header
LB: loop body
LE: loop exit
PB: predicated region body
PF: predicated region fallthrough
CT: control target
= control target key end

     0   :  { %9 = vsyncpa [#allocation3], 0  ;;  %s931_s0 = inlined_call_operand.hbm [shape: f32[2,4,256], index: 0, kind: input, shape index: {}]   ;;  %s932_s1 = inlined_call_operand.hbm [shape: s32[2,1,256], index: 1, kind: input, shape index: {}]   ;;  %s933_s2 = inlined_call_operand.vmem [shape: f32[2,1,1,1], index: 2, kind: output, shape index: {0}]   ;;  %s934_s3 = inlined_call_operand.vmem [shape: s32[2,1,1,1], index: 3, kind: output, shape index: {1}]  }
   0x1   :  { %11 = vsyncpa [#allocation3 + $0x1], 0 }
   0x2   :  { %12 = vsyncpa [#allocation5], 0 }
   0x3   :  { %14 = vsyncpa [#allocation5 + $0x1], 0  ;;  %s801_s12 = smov 0   ;;  %s803_s13 = smov 0  }
   0x4   :  { %s805_s14 = smov 0   ;;  %s807_s15 = smov 0  }
   0x5   :  { %s809_s16 = smov 0   ;;  %s811_s17 = smov 0  }
   0x6 LB: > { %s574_s18 = sadd.s32 4294967295, %s776_s17   ;;  %s32_s19 = sadd.s32 1, %s772_s16  ;;  %s776_s17 = sphi %s811_s17, %s20_s17   ;;  %s772_s16 = sphi %s809_s16, %s944_s16   ;;  %s768_s15 = sphi %s807_s15, %s943_s15   ;;  %s764_s14 = sphi %s805_s14, %s942_s14   ;;  %s760_s13 = sphi %s803_s13, %s941_s13   ;;  %s756_s12 = sphi %s801_s12, %s940_s12  }
   0x7   : > { %p34_p0 = scmp.ge.s32.totalorder %s32_s19, 2  ;;  %s41_s20 = sadd.s32 1, %s764_s14 }
   0x8   : > { %p48_p1 = scmp.ne.s32.totalorder %s764_s14, %s760_s13  ;;  %p49_p2 = scmp.eq.s32.totalorder %s776_s17, 0 }
   0x9   : > { %s946_s19 = smov (%p34_p0, %s32_s19), 0  ;;  %p54_p4 = scmp.ne.s32.totalorder %s760_s13, %s756_s12 }
   0xa   : > { %p837_p3 = por %p49_p2, %p48_p1  ;;  %s36_s22 = ssub.s32 %s772_s16, %s946_s19 }
   0xb   : > { %p55_p5 = scmp.eq.s32.totalorder %s574_s18, 0  ;;  %p39_p6 = scmp.eq.s32.totalorder %s36_s22, 0 }
   0xc   : > { %p604_p8 = scmp.lt.s32.totalorder %s776_s17, 2  ;;  %s162_s25 = sand.u32 1, %s764_s14  }
   0xd   : > { %p844_p7 = por %p55_p5, %p54_p4  ;;  %s588_s26 = sshll.u32 %s772_s16, 3 }
   0xe   : > { %s850_s24 = scalar_select %p39_p6, %s764_s14, %s41_s20  }
   0xf   : > { %s578_s27 = sshll.u32 %s162_s25, 3  ;;  %s173_s30 = scalar_lea.hbm %s931_s0, %s588_s26 }
  0x10   : > { %s175_s4 = sshll.u32 %s173_s30, 4  ;;  %s166_s5 = scalar_lea.vmem [#allocation2], %s578_s27  ;;  %s176_s4 = int_to_ptr.hbm [resolvable:$true] %s175_s4 }
  0x11   : > { %s177_s6 = sshll.u32 %s166_s5, 4  ;;  %p859_p9 = pnand %p604_p8, %p837_p3  ;;  %s178_s6 = int_to_ptr.vmem [resolvable:$true] %s177_s6 }
  0x12   : > { %p583_p10 = scmp.ge.s32.totalorder %s776_s17, 1  ;;  %p203_p11 = scmp.lt.s32.totalorder %s776_s17, 3 }
  0x13   : > { %s581_s8 = sshll.u32 %s162_s25, 1  ;;  %s163_s9 = scalar_lea.sflag [#allocation3], %s162_s25 }
  0x14   : > { %600 = dma.hbm_to_vmem [thread:$0]  (!%p859_p9), %s176_s4, 128, %s178_s6, %s163_s9  }
  0x15   : > { %p204_p12 = pnand %p583_p10, %p203_p11  ;;  %s582_s10 = sshll.u32 %s772_s16, 1 }
  0x16   : > { %s188_s11 = scalar_lea.vmem [#allocation4], %s581_s8  ;;  %s194_s21 = scalar_lea.hbm %s932_s1, %s582_s10 }
  0x17   : > { %s198_s12 = sshll.u32 %s188_s11, 4  ;;  %s196_s22 = sshll.u32 %s194_s21, 4  ;;  %s199_s12 = int_to_ptr.vmem [resolvable:$true] %s198_s12  ;;  %s197_s22 = int_to_ptr.hbm [resolvable:$true] %s196_s22 }
  0x18   : > { %s185_s26 = scalar_lea.sflag [#allocation5], %s162_s25  ;;  %207 = sbr.rel (%p204_p12) target bundleno = 296 (0x128), region = 28 }
  0x19   : > { %603 = dma.hbm_to_vmem [thread:$0]  (!%p859_p9), %s197_s22, 32, %s199_s12, %s185_s26  }
  0x1a   : > { %s209_s27 = sand.u32 (!%p204_p12), 1, %s760_s13  }
  0x1b   : > { %s584_s28 = sshll.u32 (!%p204_p12), %s209_s27, 3  ;;  %s210_s29 = scalar_lea.sflag (!%p204_p12), [#allocation3], %s209_s27 }
  0x1c   : > { %s213_s30 = scalar_lea.vmem (!%p204_p12), [#allocation2], %s584_s28 }
  0x1d   : > { %747 = dma.done.wait (%p844_p7), %s210_s29, 128  }
  0x1e   : > { %749 = vsyncadd (%p844_p7), %s210_s29, 4294967168  ;;  %s585_s4 = sshll.u32 %s209_s27, 1  ;;  %s220_s5 = scalar_lea.sflag [#allocation5], %s209_s27 }
  0x1f   : > { %s223_s6 = scalar_lea.vmem [#allocation4], %s585_s4 }
  0x20   : > { %751 = dma.done.wait (%p844_p7), %s220_s5, 32  }
  0x21   : > { %753 = vsyncadd (%p844_p7), %s220_s5, 4294967264  ;;  %vm288_vm0 = vcmask 1040384   ;;  %v778_v0 = vmov 1   ;;  %v274_v3 = vld [vmem:[%s223_s6] sm:$0x3]  ;;  %v273_v4 = vld [vmem:[%s213_s30] sm:$0xff]  ;;  %v348_v38 = vlaneseq }
  0x22   : > { %v287_v1 = vrot.slane %v778_v0, 7  ;;  %vm282_vm2 = vcmp.ne.s32.totalorder %v274_v3, 4294967196  ;;  %294 = vst [vmem:[#allocation1] ss:$2 sm:$0xff] %v273_v4  ;;  %v779_v6 = vmov 0   ;;  %vm299_vm4 = vcmask 1043456  }
  0x23   : > { %v349_v40 = vshrl.u32 %v348_v38, 7  ;;  %v780_v51 = vmov 0.025   ;;  %p261_p13 = scmp.lt.s32.totalorder %s768_s15, 1  ;;  %vm405_vm7 = vcmask 0  }
  0x24   : > { %v289_v2 = vsel %vm288_vm0, 1, %v287_v1 }
  0x25   : > { %vm290_vm1 = vcmp.ne.s32.totalorder %v289_v2, 0  ;;  %s948_s15 = smov (!%p261_p13, %s768_s15), 1 }
  0x26   : > { %vm883_vm3 = vmand %vm282_vm2, %vm290_vm1  ;;  %s266_s7 = scalar_lea.vmem %s933_s2, %s948_s15  ;;  %s272_s11 = scalar_lea.vmem %s934_s3, %s948_s15 }
  0x27   : > { %v407_v7 = vsel %vm883_vm3, 1, %v779_v6  ;;  %v292_v39 = vsel %vm883_vm3, %v274_v3, 0 }
  0x28   : > { %v408_v8 = vperm.slane %v407_v7, 0  ;;  %v409_v9 = vperm.slane %v407_v7, 1  ;;  %v350_v41 = vperm.slane %v292_v39, 0  ;;  %v351_v42 = vperm.slane %v292_v39, 1 }
  0x29   : > { %v295_v13 = vld.sshfl [vmem:[#allocation1] sm:$0xff pattern:$0x75316420]  ;;  %v296_v14 = vld.sshfl [vmem:[#allocation1 + $0x8] sm:$0xff pattern:$0x75316420] }
  0x2a   : > { %v410_v10 = vsel %vm288_vm0, %v408_v8, 0  ;;  %v411_v11 = vsel %vm288_vm0, %v409_v9, 0  ;;  %v300_v16 = vsel %vm299_vm4, %v295_v13, -inf  ;;  %v307_v17 = vsel %vm299_vm4, %v296_v14, -inf }
  0x2b   : > { %v412_v12 = vadd.s32 %v411_v11, %v410_v10  ;;  %v301_v18 = vrot.slane %v300_v16, 4  ;;  %v308_v19 = vrot.slane %v307_v17, 4  ;;  %vm352_vm5 = vcmp.eq.s32.totalorder %v349_v40, %v350_v41 }
  0x2c   : > { %vm353_vm6 = vcmp.eq.s32.totalorder %v349_v40, %v351_v42  ;;  %v354_v52 = vsel %vm352_vm5, 0.9, %v780_v51 }
  0x2d   : > { %v414_v15 = vshrl.u32 %v412_v12, 16  ;;  %v302_v21 = vmax.f32 %v300_v16, %v301_v18  ;;  %v309_v22 = vmax.f32 %v307_v17, %v308_v19  ;;  %v413_v23 = vand.u32 65535, %v412_v12 }
  0x2e   : > { %v355_v53 = vsel %vm353_vm6, 0.9, %v780_v51 }
  0x2f   : > { %v416_v20 = vcvt.s32.f32 %v414_v15  ;;  %v303_v24 = vrot.slane %v302_v21, 2  ;;  %v310_v25 = vrot.slane %v309_v22, 2  ;;  %v415_v28 = vcvt.s32.f32 %v413_v23 }
  0x31   : > { %419 = vadd.xlane.f32.xlu0 %v416_v20  ;;  %v304_v26 = vmax.f32 %v302_v21, %v303_v24  ;;  %v311_v27 = vmax.f32 %v309_v22, %v310_v25 }
  0x33   : > { %v305_v29 = vrot.slane %v304_v26, 1  ;;  %v312_v30 = vrot.slane %v311_v27, 1 }
  0x35   : > { %v306_v31 = vmax.f32 %v304_v26, %v305_v29  ;;  %v313_v32 = vmax.f32 %v311_v27, %v312_v30 }
  0x37   : > { %v316_v33 = vrot.slane %v313_v32, 4 }
  0x39   : > { %417 = vadd.xlane.f32.xlu0 %v415_v28  ;;  %v317_v34 = vsel %vm299_vm4, %v306_v31, %v316_v33 }
  0x3a   : > { %v319_v35 = vsub.f32 %v273_v4, %v317_v34 }
  0x3c   : > { %v320_v36 = vmul.f32 1.442695, %v319_v35 }
  0x3e   : > { %656 = vpow2.f32 %v320_v36 }
  0x44   : > { %v657_v37 = vpop.eup %656 }
  0x45   : > { %323 = vst [vmem:[#allocation1] ss:$2 sm:$0xff] %v657_v37 }
  0x4c   : > { %v324_v43 = vld.sshfl [vmem:[#allocation1] sm:$0xff pattern:$0x75316420]  ;;  %v325_v44 = vld.sshfl [vmem:[#allocation1 + $0x8] sm:$0xff pattern:$0x75316420] }
  0x4d   : > { %v328_v45 = vsel %vm299_vm4, %v324_v43, 0.0  ;;  %v335_v46 = vsel %vm299_vm4, %v325_v44, 0.0  ;;  %356 = vst [vmem:[#allocation1] ss:$2 sm:$0xff] %v273_v4 }
  0x4e   : > { %v329_v47 = vrot.slane %v328_v45, 4  ;;  %v336_v48 = vrot.slane %v335_v46, 4 }
  0x50   : > { %v330_v49 = vadd.f32 %v329_v47, %v328_v45  ;;  %v337_v50 = vadd.f32 %v336_v48, %v335_v46 }
  0x52   : > { %v331_v54 = vrot.slane %v330_v49, 2  ;;  %v338_v55 = vrot.slane %v337_v50, 2 }
  0x54   : > { %v332_v56 = vadd.f32 %v331_v54, %v330_v49  ;;  %v339_v57 = vadd.f32 %v338_v55, %v337_v50  ;;  %v357_v58 = vld.sshfl [vmem:[#allocation1] sm:$0xff pattern:$0x75316420]  ;;  %v358_v59 = vld.sshfl [vmem:[#allocation1 + $0x8] sm:$0xff pattern:$0x75316420] }
  0x55   : > { %v361_v60 = vmul.f32 %v357_v58, %v354_v52  ;;  %v362_v61 = vmul.f32 %v358_v59, %v355_v53 }
  0x56   : > { %v333_v62 = vrot.slane %v332_v56, 1  ;;  %v340_v63 = vrot.slane %v339_v57, 1 }
  0x57   : > { %v363_v0 = vsel %vm299_vm4, %v361_v60, 0.0  ;;  %v370_v1 = vsel %vm299_vm4, %v362_v61, 0.0 }
  0x58   : > { %v334_v2 = vadd.f32 %v333_v62, %v332_v56  ;;  %v341_v3 = vadd.f32 %v340_v63, %v339_v57  ;;  %v364_v4 = vrot.slane %v363_v0, 4  ;;  %v371_v6 = vrot.slane %v370_v1, 4 }
  0x5a   : > { %658 = vlog2.f32 %v334_v2  ;;  %v365_v7 = vadd.f32 %v364_v4, %v363_v0  ;;  %v372_v8 = vadd.f32 %v371_v6, %v370_v1 }
  0x5b   : > { %660 = vlog2.f32 %v341_v3 }
  0x5c   : > { %v366_v9 = vrot.slane %v365_v7, 2  ;;  %v373_v10 = vrot.slane %v372_v8, 2 }
  0x5e   : > { %v367_v11 = vadd.f32 %v366_v9, %v365_v7  ;;  %v374_v12 = vadd.f32 %v373_v10, %v372_v8 }
  0x60   : > { %v659_v13 = vpop.eup %658  ;;  %v368_v14 = vrot.slane %v367_v11, 1  ;;  %v375_v15 = vrot.slane %v374_v12, 1 }
  0x61   : > { %v661_v16 = vpop.eup %660  ;;  %v343_v17 = vmul.f32 0.6931472, %v659_v13 }
  0x62   : > { %v345_v18 = vmul.f32 0.6931472, %v661_v16  ;;  %v369_v21 = vadd.f32 %v368_v14, %v367_v11  ;;  %v376_v22 = vadd.f32 %v375_v15, %v374_v12 }
  0x63   : > { %v346_v19 = vadd.f32 %v343_v17, %v306_v31 }
  0x64   : > { %v347_v20 = vadd.f32 %v345_v18, %v313_v32 }
  0x65   : > { %v377_v23 = vmul.f32 0.975, %v346_v19 }
  0x66   : > { %v378_v24 = vmul.f32 0.975, %v347_v20 }
  0x67   : > { %v379_v25 = vsub.f32 %v377_v23, %v369_v21 }
  0x68   : > { %v380_v26 = vsub.f32 %v378_v24, %v376_v22 }
  0x6a   : > { %v383_v27 = vrot.slane %v380_v26, 7 }
  0x6c   : > { %v384_v28 = vsel %vm288_vm0, %v379_v25, %v383_v27 }
  0x6d   : > { %v386_v29 = vsel %vm883_vm3, %v384_v28, 0.0 }
  0x6e   : > { %v388_v30 = vperm.slane %v386_v29, 0  ;;  %v389_v33 = vperm.slane %v386_v29, 1 }
  0x70   : > { %v392_v34 = vsel %vm288_vm0, %v388_v30, 0.0  ;;  %v393_v35 = vsel %vm288_vm0, %v389_v33, 0.0 }
  0x71   : > { %v394_v31 = vadd.f32 %v393_v35, %v392_v34 }
  0x73   : > { %395 = vadd.xlane.f32.xlu1 %v394_v31 }
  0xa4   : > { %v420_v32 = vpop.xlane.xlu0 %419 }
  0xa5   : > { %v422_v36 = vcvt.f32.s32 %v420_v32 }
  0xa7   : > { %v423_v38 = vshll.u32 %v422_v36, 16 }
  0xac   : > { %v418_v37 = vpop.xlane.xlu0 %417 }
  0xad   : > { %v421_v39 = vcvt.f32.s32 %v418_v37 }
  0xaf   : > { %v424_v40 = vadd.s32 %v423_v38, %v421_v39 }
  0xb1   : > { %v425_v41 = vrot.slane %v424_v40, 4 }
  0xb3   : > { %v426_v42 = vadd.s32 %v425_v41, %v424_v40 }
  0xb5   : > { %v427_v43 = vrot.slane %v426_v42, 2 }
  0xb7   : > { %v428_v46 = vadd.s32 %v427_v43, %v426_v42 }
  0xb9   : > { %v429_v49 = vrot.slane %v428_v46, 1 }
  0xbb   : > { %v430_v52 = vadd.s32 %v429_v49, %v428_v46 }
  0xe6   : > { %v396_v5 = vpop.xlane.xlu1 %395 }
  0xe7   : > { %v397_v44 = vrot.slane %v396_v5, 4 }
  0xe9   : > { %v398_v45 = vadd.f32 %v397_v44, %v396_v5 }
  0xeb   : > { %v399_v47 = vrot.slane %v398_v45, 2 }
  0xed   : > { %v400_v48 = vadd.f32 %v399_v47, %v398_v45 }
  0xef   : > { %v401_v50 = vrot.slane %v400_v48, 1 }
  0xf1   : > { %v402_v51 = vadd.f32 %v401_v50, %v400_v48 }
  0xf3   : > { %589 = vpush %v402_v51 }
  0xf4   : > { %591 = vpush %v430_v52 }
 0x124   : > { %s590_s8 = spop %589 }
 0x125   : > { %v404_v53 = vstv %s590_s8  ;;  %s592_s12 = spop %591 }
 0x126   : > { %406 = vst.msk [vmem:[%s266_s7] sm:$0x1] %vm405_vm7, %v404_v53  ;;  %v432_v54 = vstv %s592_s12 }
 0x127   : > { %433 = vst.msk [vmem:[%s272_s11] sm:$0x1] %vm405_vm7, %v432_v54 }
 0x128 PF: > { %s20_s17 = sadd.s32 1, %s776_s17   ;;  %s940_s12 = smov %s760_s13 }
 0x129   : > { %p17_p0 = scmp.ge.s32.totalorder %s20_s17, 4   ;;  %s941_s13 = smov %s764_s14 }
 0x12a   : > { %s942_s14 = smov %s850_s24  ;;  %s943_s15 = smov %s772_s16 }
 0x12b   : > { %s944_s16 = smov %s946_s19  ;;  %19 = sbr.rel (!%p17_p0) target bundleno = 6 (0x6), region = 93 }
 0x130   :  { %475 = vsyncpa [#allocation3], 1 }
 0x131   :  { %477 = vsyncpa [#allocation3 + $0x1], 1 }
 0x132   :  { %478 = vsyncpa [#allocation5], 1 }
 0x133   :  { %480 = vsyncpa [#allocation5 + $0x1], 1 }

</bundles_post_ra>
